<compile_context>
chip_gen: v7x
topology: tpu7x:2x2x1
jax: 0.10.0
libtpu: 0.0.40
codegen_flags: <defaults>
</compile_context>

<pallas_src>
import functools

import numpy as np

import jax
import jax.numpy as jnp
from jax.experimental import pallas as pl
from jax.experimental.pallas import tpu as pltpu


def _round_up(x, m):
    return ((x + m - 1) // m) * m


def _lane_pad(d):
    # Minor (lane) dims pad to multiples of 128 in VMEM.
    return _round_up(d, 128)


def _fused_kernel(dm_ref, ch_ref, ct_ref, *refs, n_terms, n_weights, term_weight_idx):
    """One row tile, all fused terms of a sample-count group.

    dm_ref : (tile_n, 4) f32   [ray_dx, ray_dy, ray_dz, valid_mask]
    ch_ref : (1, 3S)     f32   lane -> channel index (0/1/2), resident across the grid
    ct_ref : (3S, S)     f32   0/1 channel-collapse matrix, resident across the grid
    refs   : n_terms normal refs (tile_n, 3S) native dtype,
             n_weights weight refs (tile_n, S) native dtype,
             out ref (8, 128) f32 -- per-tile partial sum written at [0, 0].
    """
    n_refs = refs[:n_terms]
    w_refs = refs[n_terms:n_terms + n_weights]
    out_ref = refs[n_terms + n_weights]

    dm = dm_ref[...]                        # (tile_n, 4) f32
    ch = ch_ref[...]                        # (1, 3S)     f32
    ct = ct_ref[...]                        # (3S, S)     f32

    # Lane-tiled ray direction matching the contiguous (N, S, 3) -> (N, 3S) layout:
    # dt[n, 3*s + c] = rays_d[n, c].
    dt = jnp.where(ch == 0.0, dm[:, 0:1],
                   jnp.where(ch == 1.0, dm[:, 1:2], dm[:, 2:3]))   # (tile_n, 3S)

    # Cast each unique weight tensor to f32 exactly once per tile.
    w32 = [w_refs[i][...].astype(jnp.float32) for i in range(n_weights)]

    acc = jnp.zeros(w32[0].shape, jnp.float32)                      # (tile_n, S)
    for t, wi in enumerate(term_weight_idx):                        # static unroll, T <= 3
        nf = n_refs[t][...].astype(jnp.float32)                     # (tile_n, 3S)
        r = jnp.maximum(nf * dt, 0.0)                               # relu per channel, interleaved
        # Fold the 3 channels of each sample with a 0/1 matmul on the otherwise-idle MXU.
        # r is split into bf16-exact hi/lo parts so the fold stays f32-accurate even if the
        # MXU path evaluates f32 operands at bf16 precision.
        r_hi = r.astype(jnp.bfloat16).astype(jnp.float32)
        r_lo = r - r_hi
        per_s = (jnp.dot(r_hi, ct, preferred_element_type=jnp.float32) +
                 jnp.dot(r_lo, ct, preferred_element_type=jnp.float32))  # (tile_n, S)
        acc = acc + per_s * w32[wi]

    # Select (never multiply) away invalid rays and ragged-tail padding rows so that NaN/Inf
    # garbage in those rows cannot leak into the loss (matches PyTorch boolean indexing).
    acc = jnp.where(dm[:, 3:4] > 0.0, acc, 0.0)
    partial = jnp.sum(acc)

    rr = jax.lax.broadcasted_iota(jnp.int32, (8, 128), 0)
    cc = jax.lax.broadcasted_iota(jnp.int32, (8, 128), 1)
    out_ref[...] = jnp.where((rr == 0) & (cc == 0), partial, jnp.float32(0.0))


def _per_row_vmem_bytes(normals, weights, S):
    """Per-row VMEM bytes of one set of input blocks (lane dims padded to 128)."""
    L = 3 * S
    b = sum(_lane_pad(L) * a.dtype.itemsize for a in normals)
    b += sum(_lane_pad(S) * a.dtype.itemsize for a in weights)
    b += _lane_pad(4) * 4          # the (tile_n, 4) dm block pads its 4 lanes to 128
    return b


def _choose_tile_n(N, per_row_bytes, max_tile_n=1024, budget_bytes=8 << 20):
    rows_fit = max(8, int(budget_bytes // per_row_bytes))
    tile = min(max_tile_n, rows_fit, _round_up(N, 8))
    if N > 8:
        # v7x megacore: keep >= 2 grid steps so both TensorCores get work.
        tile = min(tile, _round_up((N + 1) // 2, 8))
    return max(8, (tile // 8) * 8)


def _pallas_partial_sum(dm4, ch, ct, normals, weights, term_weight_idx, tile_n, grid_n):
    """Masked sum over grid_n*tile_n rows of all fused terms (every block fully in bounds)."""
    T, W = len(normals), len(weights)
    L, S = ct.shape

    in_specs = [
        pl.BlockSpec((tile_n, 4), lambda i: (i, 0)),
        pl.BlockSpec((1, L), lambda i: (0, 0)),
        pl.BlockSpec((L, S), lambda i: (0, 0)),
    ]
    in_specs += [pl.BlockSpec((tile_n, L), lambda i: (i, 0)) for _ in range(T)]
    in_specs += [pl.BlockSpec((tile_n, S), lambda i: (i, 0)) for _ in range(W)]

    # vmem_limit derived from the actual double-buffered block sizes + f32 temporaries.
    block_bytes = tile_n * _per_row_vmem_bytes(normals, weights, S)
    temp_bytes = 3 * tile_n * _lane_pad(L) * 4
    vmem_limit = int(min(32 << 20, max(16 << 20, 2 * block_bytes + temp_bytes + (2 << 20))))

    out = pl.pallas_call(
        functools.partial(_fused_kernel, n_terms=T, n_weights=W,
                          term_weight_idx=tuple(term_weight_idx)),
        out_shape=jax.ShapeDtypeStruct((grid_n * 8, 128), jnp.float32),
        grid=(grid_n,),
        in_specs=in_specs,
        out_specs=pl.BlockSpec((8, 128), lambda i: (i, 0)),
        compiler_params=pltpu.CompilerParams(
            dimension_semantics=("parallel",),
            vmem_limit_bytes=vmem_limit,
        ),
    )(dm4, ch, ct, *normals, *weights)

    # Only [0, 0] of each per-tile (8, 128) slab is nonzero.
    return jnp.sum(out)


def _group_masked_sum(normals, weights, term_weight_idx, dm4, S):
    """Masked sum for all terms sharing sample count S, without copying the big arrays."""
    N = dm4.shape[0]
    L = 3 * S

    k = np.arange(L)
    ch = jnp.asarray((k % 3).astype(np.float32)).reshape(1, L)                         # lane -> channel
    ct = jnp.asarray(((k[:, None] // 3) == np.arange(S)[None, :]).astype(np.float32))  # channel fold

    tile_n = _choose_tile_n(N, _per_row_vmem_bytes(normals, weights, S))
    n_main = (N // tile_n) * tile_n

    total = jnp.float32(0.0)
    if n_main > 0:
        # Aligned part: big arrays are used in place (no pad / copy), every block in bounds.
        total = total + _pallas_partial_sum(
            dm4, ch, ct, normals, weights, term_weight_idx, tile_n, n_main // tile_n)

    tail = N - n_main
    if tail > 0:
        # Only the < tile_n leftover rows are sliced out and padded (tiny copies); padded rows
        # carry valid_mask == 0 so they contribute exactly 0.
        t8 = _round_up(tail, 8)
        pad = t8 - tail
        dm4_t = jnp.pad(dm4[n_main:], ((0, pad), (0, 0)))
        normals_t = [jnp.pad(a[n_main:], ((0, pad), (0, 0))) for a in normals]
        weights_t = [jnp.pad(a[n_main:], ((0, pad), (0, 0))) for a in weights]
        total = total + _pallas_partial_sum(
            dm4_t, ch, ct, normals_t, weights_t, term_weight_idx, t8, 1)

    return total


def normal_reg_loss(inputs, batch, coef=1.0, ext_supervise_grad_normal=True):
    rays_d = batch['rays'][..., 3:6].reshape(-1, 3).astype(jnp.float32)
    N = rays_d.shape[0]
    if 'valid_mask' in batch:
        maskf = batch['valid_mask'].reshape(-1).astype(jnp.float32)
    else:
        maskf = jnp.ones((N,), jnp.float32)
    cnt = jnp.sum(maskf)                                  # number of valid rays
    # Tiny (N, 4) side input: ray direction + validity.  The mask is applied with an in-kernel
    # select, never multiplied into the data.
    dm4 = jnp.concatenate([rays_d, maskf[:, None]], axis=1)

    # Same term collection as the PyTorch module.
    terms = []
    for typ in ['coarse', 'fine']:
        if f'pred_normal_{typ}' in inputs:
            terms.append((f'pred_normal_{typ}', f'weights_{typ}'))
    if ext_supervise_grad_normal:
        for typ in ['fine']:
            if f'normal_{typ}' in inputs:
                terms.append((f'normal_{typ}', f'weights_{typ}'))

    # Group terms by sample count so each group fuses into one pallas_call.
    groups = {}
    for nk, wk in terms:
        S = inputs[nk].reshape(N, -1, 3).shape[1]
        groups.setdefault(S, []).append((nk, wk))

    loss = jnp.float32(0.0)
    for S, group in groups.items():
        wkeys, widx = [], []
        for _, wk in group:
            if wk not in wkeys:
                wkeys.append(wk)
            widx.append(wkeys.index(wk))
        # Free reshapes only: native contiguous layout, no transpose / stack / full-array pad.
        normals = [inputs[nk].reshape(N, 3 * S) for nk, _ in group]
        weights = [inputs[wk].reshape(N, S) for wk in wkeys]
        group_sum = _group_masked_sum(normals, weights, widx, dm4, S)
        # Same NaN behavior as PyTorch when cnt == 0 (mean over an empty selection).
        loss = loss + group_sum / (cnt * S)

    return jnp.float32(coef) * loss


def _reference_loss(inputs, batch, coef=1.0, ext_supervise_grad_normal=True):
    """Pure-JAX (eager) reference mirroring the PyTorch code, for validation."""
    rays_d = batch['rays'][..., 3:6].reshape(-1, 3)
    mask = batch['valid_mask'].reshape(-1)
    loss = 0.0
    for typ in ['coarse', 'fine']:
        key = f'pred_normal_{typ}'
        if key in inputs:
            n = inputs[key][mask]
            d = rays_d[mask][:, None, :]
            w = inputs[f'weights_{typ}'][mask]
            loss += jnp.mean(jnp.sum(jax.nn.relu(n * d), axis=-1) * w)
    if ext_supervise_grad_normal:
        for typ in ['fine']:
            key = f'normal_{typ}'
            if key in inputs:
                n = inputs[key][mask]
                d = rays_d[mask][:, None, :]
                w = inputs[f'weights_{typ}'][mask]
                loss += jnp.mean(jnp.sum(jax.nn.relu(n * d), axis=-1) * w)
    return coef * loss


if __name__ == "__main__":
    def make_case(key, N, S, dtype):
        ks = jax.random.split(key, 8)
        rays = jax.random.normal(ks[0], (N, 8), dtype=jnp.float32)   # [origin(3), dir(3), near, far]
        valid_mask = jax.random.bernoulli(ks[1], 0.75, (N,))
        inputs = {
            'pred_normal_coarse': jax.random.normal(ks[2], (N, S, 3)).astype(dtype),
            'pred_normal_fine':   jax.random.normal(ks[3], (N, S, 3)).astype(dtype),
            'normal_fine':        jax.random.normal(ks[4], (N, S, 3)).astype(dtype),
            'weights_coarse':     jax.nn.softmax(jax.random.normal(ks[5], (N, S)), axis=-1).astype(dtype),
            'weights_fine':       jax.nn.softmax(jax.random.normal(ks[6], (N, S)), axis=-1).astype(dtype),
        }
        batch = {'rays': rays, 'valid_mask': valid_mask}
        return inputs, batch

    key = jax.random.PRNGKey(0)
    k1, k2 = jax.random.split(key)

    # Case 1: float32, N a multiple of the row tile (aligned path only).
    inputs, batch = make_case(k1, 32, 16, jnp.float32)
    loss = jax.block_until_ready(normal_reg_loss(inputs, batch, coef=1.0))
    ref = _reference_loss(inputs, batch, coef=1.0)
    assert jnp.allclose(loss, ref, rtol=1e-4, atol=1e-6), (loss, ref)

    # Case 2: bfloat16 inputs, ragged N=30 (exercises in-kernel cast + aligned-main/tail split).
    inputs2, batch2 = make_case(k2, 30, 16, jnp.bfloat16)
    loss2 = jax.block_until_ready(normal_reg_loss(inputs2, batch2, coef=0.5))
    ref2 = _reference_loss(inputs2, batch2, coef=0.5)
    assert jnp.allclose(loss2, ref2, rtol=1e-4, atol=1e-5), (loss2, ref2)

    print("KERNEL_OK")
</pallas_src>

<mosaic_0001>
module attributes {stable_mosaic.version = 11 : i64} {
  func.func @_fused_kernel(%arg0: i32, %arg1: memref<16x4xf32, #tpu.memory_space<vmem>>, %arg2: memref<1x48xf32, #tpu.memory_space<vmem>>, %arg3: memref<48x16xf32, #tpu.memory_space<vmem>>, %arg4: memref<16x48xf32, #tpu.memory_space<vmem>>, %arg5: memref<16x48xf32, #tpu.memory_space<vmem>>, %arg6: memref<16x48xf32, #tpu.memory_space<vmem>>, %arg7: memref<16x16xf32, #tpu.memory_space<vmem>>, %arg8: memref<16x16xf32, #tpu.memory_space<vmem>>, %arg9: memref<8x128xf32, #tpu.memory_space<vmem>>) attributes {dimension_semantics = [#tpu.dimension_semantics<parallel>], iteration_bounds = array<i64: 2>, scalar_prefetch = 0 : i64, scratch_operands = 0 : i64, tpu.core_type = #tpu.core_type<tc>, window_params = [{transform_indices = @transform_0, window_bounds = array<i64: 16, 4>}, {pipeline_mode = #tpu.pipeline_mode<synchronous>, transform_indices = @transform_1, window_bounds = array<i64: 1, 48>}, {pipeline_mode = #tpu.pipeline_mode<synchronous>, transform_indices = @transform_2, window_bounds = array<i64: 48, 16>}, {transform_indices = @transform_3, window_bounds = array<i64: 16, 48>}, {transform_indices = @transform_4, window_bounds = array<i64: 16, 48>}, {transform_indices = @transform_5, window_bounds = array<i64: 16, 48>}, {transform_indices = @transform_6, window_bounds = array<i64: 16, 16>}, {transform_indices = @transform_7, window_bounds = array<i64: 16, 16>}, {transform_indices = @transform_8, window_bounds = array<i64: 8, 128>}]} {
    %c0 = arith.constant 0 : index
    %c0_0 = arith.constant 0 : index
    %0 = vector.load %arg1[%c0, %c0_0] : memref<16x4xf32, #tpu.memory_space<vmem>>, vector<16x4xf32>
    %c0_1 = arith.constant 0 : index
    %c0_2 = arith.constant 0 : index
    %1 = vector.load %arg2[%c0_1, %c0_2] : memref<1x48xf32, #tpu.memory_space<vmem>>, vector<1x48xf32>
    %c0_3 = arith.constant 0 : index
    %c0_4 = arith.constant 0 : index
    %2 = vector.load %arg3[%c0_3, %c0_4] : memref<48x16xf32, #tpu.memory_space<vmem>>, vector<48x16xf32>
    %cst = arith.constant 0.000000e+00 : f32
    %3 = vector.broadcast %cst : f32 to vector<1x48xf32>
    %4 = arith.cmpf oeq, %1, %3 : vector<1x48xf32>
    %5 = vector.extract_strided_slice %0 {offsets = [0, 0], sizes = [16, 1], strides = [1, 1]} : vector<16x4xf32> to vector<16x1xf32>
    %cst_5 = arith.constant 1.000000e+00 : f32
    %6 = vector.broadcast %cst_5 : f32 to vector<1x48xf32>
    %7 = arith.cmpf oeq, %1, %6 : vector<1x48xf32>
    %8 = vector.extract_strided_slice %0 {offsets = [0, 1], sizes = [16, 1], strides = [1, 1]} : vector<16x4xf32> to vector<16x1xf32>
    %9 = vector.extract_strided_slice %0 {offsets = [0, 2], sizes = [16, 1], strides = [1, 1]} : vector<16x4xf32> to vector<16x1xf32>
    %10 = vector.shape_cast %7 : vector<1x48xi1> to vector<1x48xi1>
    %11 = vector.broadcast %10 : vector<1x48xi1> to vector<16x48xi1>
    %12 = vector.shape_cast %8 : vector<16x1xf32> to vector<16x1xf32>
    %13 = vector.broadcast %12 : vector<16x1xf32> to vector<16x48xf32>
    %14 = vector.shape_cast %9 : vector<16x1xf32> to vector<16x1xf32>
    %15 = vector.broadcast %14 : vector<16x1xf32> to vector<16x48xf32>
    %16 = arith.select %11, %13, %15 : vector<16x48xi1>, vector<16x48xf32>
    %17 = vector.shape_cast %4 : vector<1x48xi1> to vector<1x48xi1>
    %18 = vector.broadcast %17 : vector<1x48xi1> to vector<16x48xi1>
    %19 = vector.shape_cast %5 : vector<16x1xf32> to vector<16x1xf32>
    %20 = vector.broadcast %19 : vector<16x1xf32> to vector<16x48xf32>
    %21 = arith.select %18, %20, %16 : vector<16x48xi1>, vector<16x48xf32>
    %c0_6 = arith.constant 0 : index
    %c0_7 = arith.constant 0 : index
    %22 = vector.load %arg7[%c0_6, %c0_7] : memref<16x16xf32, #tpu.memory_space<vmem>>, vector<16x16xf32>
    %c0_8 = arith.constant 0 : index
    %c0_9 = arith.constant 0 : index
    %23 = vector.load %arg8[%c0_8, %c0_9] : memref<16x16xf32, #tpu.memory_space<vmem>>, vector<16x16xf32>
    %cst_10 = arith.constant 0.000000e+00 : f32
    %24 = vector.broadcast %cst_10 : f32 to vector<16x16xf32>
    %c0_11 = arith.constant 0 : index
    %c0_12 = arith.constant 0 : index
    %25 = vector.load %arg4[%c0_11, %c0_12] : memref<16x48xf32, #tpu.memory_space<vmem>>, vector<16x48xf32>
    %26 = arith.mulf %25, %21 : vector<16x48xf32>
    %cst_13 = arith.constant 0.000000e+00 : f32
    %27 = vector.broadcast %cst_13 : f32 to vector<16x48xf32>
    %28 = arith.maximumf %26, %27 : vector<16x48xf32>
    %29 = arith.truncf %28 : vector<16x48xf32> to vector<16x48xbf16>
    %30 = arith.extf %29 : vector<16x48xbf16> to vector<16x48xf32>
    %31 = arith.subf %28, %30 : vector<16x48xf32>
    %cst_14 = arith.constant dense<0.000000e+00> : vector<16x16xf32>
    %32 = tpu.matmul %30, %2, %cst_14 {dimension_numbers = #tpu.dot_dimension_numbers<[1], [0], [0], [1], [0, 0, 1, 1], [], []>} : vector<16x48xf32>, vector<48x16xf32>, vector<16x16xf32> -> vector<16x16xf32>
    %cst_15 = arith.constant dense<0.000000e+00> : vector<16x16xf32>
    %33 = tpu.matmul %31, %2, %cst_15 {dimension_numbers = #tpu.dot_dimension_numbers<[1], [0], [0], [1], [0, 0, 1, 1], [], []>} : vector<16x48xf32>, vector<48x16xf32>, vector<16x16xf32> -> vector<16x16xf32>
    %34 = arith.addf %32, %33 : vector<16x16xf32>
    %35 = arith.mulf %34, %22 : vector<16x16xf32>
    %36 = arith.addf %24, %35 : vector<16x16xf32>
    %c0_16 = arith.constant 0 : index
    %c0_17 = arith.constant 0 : index
    %37 = vector.load %arg5[%c0_16, %c0_17] : memref<16x48xf32, #tpu.memory_space<vmem>>, vector<16x48xf32>
    %38 = arith.mulf %37, %21 : vector<16x48xf32>
    %cst_18 = arith.constant 0.000000e+00 : f32
    %39 = vector.broadcast %cst_18 : f32 to vector<16x48xf32>
    %40 = arith.maximumf %38, %39 : vector<16x48xf32>
    %41 = arith.truncf %40 : vector<16x48xf32> to vector<16x48xbf16>
    %42 = arith.extf %41 : vector<16x48xbf16> to vector<16x48xf32>
    %43 = arith.subf %40, %42 : vector<16x48xf32>
    %cst_19 = arith.constant dense<0.000000e+00> : vector<16x16xf32>
    %44 = tpu.matmul %42, %2, %cst_19 {dimension_numbers = #tpu.dot_dimension_numbers<[1], [0], [0], [1], [0, 0, 1, 1], [], []>} : vector<16x48xf32>, vector<48x16xf32>, vector<16x16xf32> -> vector<16x16xf32>
    %cst_20 = arith.constant dense<0.000000e+00> : vector<16x16xf32>
    %45 = tpu.matmul %43, %2, %cst_20 {dimension_numbers = #tpu.dot_dimension_numbers<[1], [0], [0], [1], [0, 0, 1, 1], [], []>} : vector<16x48xf32>, vector<48x16xf32>, vector<16x16xf32> -> vector<16x16xf32>
    %46 = arith.addf %44, %45 : vector<16x16xf32>
    %47 = arith.mulf %46, %23 : vector<16x16xf32>
    %48 = arith.addf %36, %47 : vector<16x16xf32>
    %c0_21 = arith.constant 0 : index
    %c0_22 = arith.constant 0 : index
    %49 = vector.load %arg6[%c0_21, %c0_22] : memref<16x48xf32, #tpu.memory_space<vmem>>, vector<16x48xf32>
    %50 = arith.mulf %49, %21 : vector<16x48xf32>
    %cst_23 = arith.constant 0.000000e+00 : f32
    %51 = vector.broadcast %cst_23 : f32 to vector<16x48xf32>
    %52 = arith.maximumf %50, %51 : vector<16x48xf32>
    %53 = arith.truncf %52 : vector<16x48xf32> to vector<16x48xbf16>
    %54 = arith.extf %53 : vector<16x48xbf16> to vector<16x48xf32>
    %55 = arith.subf %52, %54 : vector<16x48xf32>
    %cst_24 = arith.constant dense<0.000000e+00> : vector<16x16xf32>
    %56 = tpu.matmul %54, %2, %cst_24 {dimension_numbers = #tpu.dot_dimension_numbers<[1], [0], [0], [1], [0, 0, 1, 1], [], []>} : vector<16x48xf32>, vector<48x16xf32>, vector<16x16xf32> -> vector<16x16xf32>
    %cst_25 = arith.constant dense<0.000000e+00> : vector<16x16xf32>
    %57 = tpu.matmul %55, %2, %cst_25 {dimension_numbers = #tpu.dot_dimension_numbers<[1], [0], [0], [1], [0, 0, 1, 1], [], []>} : vector<16x48xf32>, vector<48x16xf32>, vector<16x16xf32> -> vector<16x16xf32>
    %58 = arith.addf %56, %57 : vector<16x16xf32>
    %59 = arith.mulf %58, %23 : vector<16x16xf32>
    %60 = arith.addf %48, %59 : vector<16x16xf32>
    %61 = vector.extract_strided_slice %0 {offsets = [0, 3], sizes = [16, 1], strides = [1, 1]} : vector<16x4xf32> to vector<16x1xf32>
    %cst_26 = arith.constant 0.000000e+00 : f32
    %62 = vector.broadcast %cst_26 : f32 to vector<16x1xf32>
    %63 = arith.cmpf ogt, %61, %62 : vector<16x1xf32>
    %cst_27 = arith.constant 0.000000e+00 : f32
    %64 = vector.shape_cast %63 : vector<16x1xi1> to vector<16x1xi1>
    %65 = vector.broadcast %64 : vector<16x1xi1> to vector<16x16xi1>
    %66 = vector.broadcast %cst_27 : f32 to vector<16x16xf32>
    %67 = arith.select %65, %60, %66 : vector<16x16xi1>, vector<16x16xf32>
    %68 = vector.shape_cast %67 : vector<16x16xf32> to vector<1x16x16xf32>
    %cst_28 = arith.constant dense<0.000000e+00> : vector<1xf32>
    %69 = vector.multi_reduction <add>, %68, %cst_28 [1, 2] : vector<1x16x16xf32> to vector<1xf32>
    %70 = vector.shape_cast %69 : vector<1xf32> to vector<1x1x1xf32>
    %71 = vector.extract %70[0, 0, 0] : f32 from vector<1x1x1xf32>
    %72 = tpu.iota {dimensions = array<i32: 0>} : vector<8x128xi32>
    %73 = tpu.iota {dimensions = array<i32: 1>} : vector<8x128xi32>
    %c0_i32 = arith.constant 0 : i32
    %74 = vector.broadcast %c0_i32 : i32 to vector<8x128xi32>
    %75 = arith.cmpi eq, %72, %74 : vector<8x128xi32>
    %c0_i32_29 = arith.constant 0 : i32
    %76 = vector.broadcast %c0_i32_29 : i32 to vector<8x128xi32>
    %77 = arith.cmpi eq, %73, %76 : vector<8x128xi32>
    %78 = arith.andi %75, %77 : vector<8x128xi1>
    %cst_30 = arith.constant 0.000000e+00 : f32
    %79 = vector.broadcast %71 : f32 to vector<8x128xf32>
    %80 = vector.broadcast %cst_30 : f32 to vector<8x128xf32>
    %81 = arith.select %78, %79, %80 : vector<8x128xi1>, vector<8x128xf32>
    %c0_31 = arith.constant 0 : index
    %c0_32 = arith.constant 0 : index
    %82 = vector.load %arg9[%c0_31, %c0_32] : memref<8x128xf32, #tpu.memory_space<vmem>>, vector<8x128xf32>
    tpu.vector_store %arg9[%c0_31, %c0_32], %81 {strides = array<i32>} : memref<8x128xf32, #tpu.memory_space<vmem>>, vector<8x128xf32>,
    return
  }
  func.func @transform_0(%arg0: i32) -> (i32, i32) {
    %c0_i32 = arith.constant 0 : i32
    %c0_i32_0 = arith.constant 0 : i32
    return %arg0, %c0_i32 : i32, i32
  }
  func.func @transform_1(%arg0: i32) -> (i32, i32) {
    %c0_i32 = arith.constant 0 : i32
    %c0_i32_0 = arith.constant 0 : i32
    %c0_i32_1 = arith.constant 0 : i32
    return %c0_i32, %c0_i32_0 : i32, i32
  }
  func.func @transform_2(%arg0: i32) -> (i32, i32) {
    %c0_i32 = arith.constant 0 : i32
    %c0_i32_0 = arith.constant 0 : i32
    %c0_i32_1 = arith.constant 0 : i32
    return %c0_i32, %c0_i32_0 : i32, i32
  }
  func.func @transform_3(%arg0: i32) -> (i32, i32) {
    %c0_i32 = arith.constant 0 : i32
    %c0_i32_0 = arith.constant 0 : i32
    return %arg0, %c0_i32 : i32, i32
  }
  func.func @transform_4(%arg0: i32) -> (i32, i32) {
    %c0_i32 = arith.constant 0 : i32
    %c0_i32_0 = arith.constant 0 : i32
    return %arg0, %c0_i32 : i32, i32
  }
  func.func @transform_5(%arg0: i32) -> (i32, i32) {
    %c0_i32 = arith.constant 0 : i32
    %c0_i32_0 = arith.constant 0 : i32
    return %arg0, %c0_i32 : i32, i32
  }
  func.func @transform_6(%arg0: i32) -> (i32, i32) {
    %c0_i32 = arith.constant 0 : i32
    %c0_i32_0 = arith.constant 0 : i32
    return %arg0, %c0_i32 : i32, i32
  }
  func.func @transform_7(%arg0: i32) -> (i32, i32) {
    %c0_i32 = arith.constant 0 : i32
    %c0_i32_0 = arith.constant 0 : i32
    return %arg0, %c0_i32 : i32, i32
  }
  func.func @transform_8(%arg0: i32) -> (i32, i32) {
    %c0_i32 = arith.constant 0 : i32
    %c0_i32_0 = arith.constant 0 : i32
    return %arg0, %c0_i32 : i32, i32
  }
}

</mosaic_0001>

<bundles_post_ra>
// kernel: tpu_custom_call.1
= control target key start
LH: loop header
LB: loop body
LE: loop exit
PB: predicated region body
PF: predicated region fallthrough
CT: control target
= control target key end

     0   :  { %13 = vsyncpa [#allocation3], 0  ;;  %s1792_s0 = inlined_call_operand.vmem [shape: f32[32,4], index: 0, kind: input, shape index: {}]   ;;  %s1793_s1 = inlined_call_operand.vmem [shape: f32[1,48], index: 1, kind: input, shape index: {}]   ;;  %s1794_s2 = inlined_call_operand.vmem [shape: f32[48,16], index: 2, kind: input, shape index: {}]   ;;  %s1795_s3 = inlined_call_operand.vmem [shape: f32[32,48], index: 3, kind: input, shape index: {}]   ;;  %s1796_s4 = inlined_call_operand.vmem [shape: f32[32,48], index: 4, kind: input, shape index: {}]   ;;  %s1797_s5 = inlined_call_operand.vmem [shape: f32[32,48], index: 5, kind: input, shape index: {}]   ;;  %s1798_s6 = inlined_call_operand.vmem [shape: f32[32,16], index: 6, kind: input, shape index: {}]   ;;  %s1799_s7 = inlined_call_operand.vmem [shape: f32[32,16], index: 7, kind: input, shape index: {}]   ;;  %s1800_s8 = inlined_call_operand.hbm [shape: f32[16,128], index: 8, kind: output, shape index: {}]  }
   0x1   :  { %15 = vsyncpa [#allocation3 + $0x1], 0  ;;  %s1589_s27 = smov 0   ;;  %s1591_s28 = smov 0  }
   0x2   :  { %s1593_s29 = smov 0   ;;  %s1595_s30 = smov 0  }
   0x3 LB: > { %s1610_s9 = sadd.s32 4294967295, %s1537_s30   ;;  %s1175_s10 = sadd.s32 4294967294, %s1537_s30   ;;  %s1537_s30 = sphi %s1595_s30, %s1806_s30   ;;  %s1533_s29 = sphi %s1593_s29, %s1805_s29   ;;  %s1529_s28 = sphi %s1591_s28, %s1804_s28   ;;  %s1525_s27 = sphi %s1589_s27, %s1803_s27  }
   0x4   : > { %s1614_s11 = sadd.s32 1, %s1537_s30   ;;  %s226_s12 = sadd.s32 1, %s1533_s29 }
   0x5   : > { %s223_s13 = ssub.s32 %s1537_s30, %s1614_s11  ;;  %p236_p0 = scmp.ne.s32.totalorder %s1533_s29, %s1529_s28 }
   0x6   : > { %p224_p1 = scmp.eq.s32.totalorder %s223_s13, 0  ;;  %p237_p2 = scmp.eq.s32.totalorder %s1610_s9, 1 }
   0x7   : > { %p242_p3 = scmp.ne.s32.totalorder %s1529_s28, %s1525_s27  ;;  %p243_p4 = scmp.eq.s32.totalorder %s1175_s10, 1 }
   0x8   : > { %s1625_s14 = scalar_select %p224_p1, %s1533_s29, %s226_s12  }
   0x9   : > { %p1627_p5 = por %p237_p2, %p236_p0  ;;  %p1631_p6 = por %p243_p4, %p242_p3 }
   0xa   : > { %p1178_p7 = scmp.ge.s32.totalorder %s1537_s30, 1  ;;  %p321_p8 = scmp.lt.s32.totalorder %s1537_s30, 3 }
   0xc   : > { %p322_p9 = pnand %p1178_p7, %p321_p8 }
   0xd   : > { %s1180_s17 = sshll.u32 (!%p322_p9), %s1610_s9, 1  ;;  %v1539_v0 = vmov (!%p322_p9), 2   ;;  %v1540_v1 = vmov (!%p322_p9), 1   ;;  %v419_v4 = vld [vmem:[%s1794_s2] sm:$0xff] (!%p322_p9)  ;;  %v420_v5 = vld [vmem:[%s1794_s2 + $0x8] sm:$0xff] (!%p322_p9)  ;;  %v1541_v7 = vmov (!%p322_p9), 0   ;;  %v428_v17 = vlaneseq (!%p322_p9) }
   0xe   : > { %325 = sbr.rel (%p322_p9) target bundleno = 641 (0x281), region = 52  ;;  %1470 = vset.pattern.permute.xlu1 (!%p322_p9), %v1539_v0  ;;  %1469 = vset.pattern.permute.xlu0 (!%p322_p9), %v1540_v1  ;;  %p381_p10 = scmp.lt.s32.totalorder (!%p322_p9), %s1180_s17, 3  ;;  %v1650_v6 = vpack.c.bf16 (!%p322_p9), %v420_v5, %v419_v4  ;;  %v421_v8 = vld [vmem:[%s1794_s2 + $0x10] sm:$0xff] (!%p322_p9)  ;;  %v422_v9 = vld [vmem:[%s1794_s2 + $0x18] sm:$0xff] (!%p322_p9)  ;;  %v423_v11 = vld [vmem:[%s1794_s2 + $0x20] sm:$0xff] (!%p322_p9)  ;;  %v1542_v14 = vmov (!%p322_p9), 3  }
   0xf   : > { %v1662_v10 = vpack.c.bf16 (!%p322_p9), %v422_v9, %v421_v8  ;;  %v424_v12 = vld [vmem:[%s1794_s2 + $0x28] sm:$0xff] (!%p322_p9)  ;;  %v418_v18 = vld [vmem:[%s1793_s1] sm:$0x1] (!%p322_p9)  ;;  %v1686_v19 = vshrl.u32 (!%p322_p9), %v428_v17, 7  ;;  %vm484_vm6 = vcmask (!%p322_p9), 392192   ;;  %vm1019_vm8 = vcmask (!%p322_p9), 130048  }
  0x10   : > { %1359 = vmatprep.subr.bf16.mxu0 (!%p322_p9), %v1650_v6  ;;  %1347 = vmatprep.subr.bf16.mxu1 (!%p322_p9), %v1650_v6  ;;  %v1674_v13 = vpack.c.bf16 (!%p322_p9), %v424_v12, %v423_v11  ;;  %vm426_vm2 = vcmp.eq.f32.partialorder (!%p322_p9), %v418_v18, 1.0  ;;  %vm425_vm3 = vcmp.eq.f32.partialorder (!%p322_p9), %v418_v18, 0.0  ;;  %s1205_s12 = sshll.u32 (!%p322_p9), %s1610_s9, 7  ;;  %s1543_s9 = smov (!%p322_p9), [#allocation2]  }
  0x11   : > { %1361 = vmatpush3.bf16.msra.mxu0 (!%p322_p9), %v1650_v6  ;;  %1349 = vmatpush3.bf16.msra.mxu1 (!%p322_p9), %v1650_v6  ;;  %v430_v20 = vsub.s32 (!%p322_p9), 0, %v1686_v19  ;;  %v427_v21 = vsel (!%p322_p9), %vm426_vm2, 1, %v1541_v7  ;;  %v453_v24 = vsel (!%p322_p9), %vm425_vm3, 1, %v1541_v7  ;;  %vm1036_vm10 = vcmp.eq.s32.totalorder (!%p322_p9), %v1686_v19, 0  ;;  %s1750_s22 = scalar_lea.hbm (!%p322_p9), %s1800_s8, %s1205_s12  ;;  %s1479_s25 = sshll.u32 (!%p322_p9), %s1543_s9, 4  ;;  %s1480_s25 = int_to_ptr.vmem [resolvable:$false] %s1479_s25 }
  0x12   : > { %1363 = vmatprep.subr.bf16.mxu0 (!%p322_p9), %v1662_v10  ;;  %1351 = vmatprep.subr.bf16.mxu1 (!%p322_p9), %v1662_v10 }
  0x13   : > { %v431_v25 = vrot.slane (!%p322_p9), %v427_v21, %v430_v20  ;;  %v457_v26 = vrot.slane (!%p322_p9), %v453_v24, %v430_v20 }
  0x15   : > { %s1808_s17 = smov (!%p381_p10, %s1180_s17), 3  ;;  %1365 = vmatpush3.bf16.msra.mxu0 %v1662_v10  ;;  %1353 = vmatpush3.bf16.msra.mxu1 %v1662_v10  ;;  %vm432_vm4 = vcmp.eq.s32.totalorder %v431_v25, 1  ;;  %vm458_vm5 = vcmp.eq.s32.totalorder %v457_v26, 1 }
  0x16   : > { %s1638_s18 = sshll.u32 %s1808_s17, 3  ;;  %1367 = vmatprep.subr.bf16.mxu0 %v1674_v13  ;;  %1355 = vmatprep.subr.bf16.mxu1 %v1674_v13 }
  0x17   : > { %s384_s21 = scalar_lea.vmem %s1792_s0, %s1638_s18  ;;  %s390_s26 = scalar_lea.vmem %s1795_s3, %s1638_s18 }
  0x18   : > { %v416_v2 = vld [vmem:[%s384_s21] sm:$0xff]  ;;  %v417_v3 = vld [vmem:[%s384_s21 + $0x8] sm:$0xff]  ;;  %s396_s13 = scalar_lea.vmem %s1796_s4, %s1638_s18  ;;  %s402_s20 = scalar_lea.vmem %s1797_s5, %s1638_s18 }
  0x19   : > { %444 = vperm.xlu1 %1470, %v416_v2   ;;  %435 = vperm.xlu0 %1469, %v416_v2   ;;  %vm1006_vm0 = vcmp.gt.f32.partialorder %v417_v3, 0.0  ;;  %vm1005_vm1 = vcmp.gt.f32.partialorder %v416_v2, 0.0  ;;  %v474_v29 = vld [vmem:[%s390_s26 + $0x8] sm:$0xff]  ;;  %v473_v32 = vld [vmem:[%s390_s26] sm:$0xff]  ;;  %s408_s23 = scalar_lea.vmem %s1798_s6, %s1638_s18  ;;  %s414_s26 = scalar_lea.vmem %s1799_s7, %s1638_s18 }
  0x1a   : > { %1369 = vmatpush3.bf16.msra.mxu0 %v1674_v13  ;;  %1357 = vmatpush3.bf16.msra.mxu1 %v1674_v13  ;;  %v1008_v15 = vsel %vm1006_vm0, 1, %v1541_v7  ;;  %v1007_v16 = vsel %vm1005_vm1, 1, %v1541_v7  ;;  %v652_v30 = vld [vmem:[%s396_s13 + $0x8] sm:$0xff]  ;;  %v651_v36 = vld [vmem:[%s396_s13] sm:$0xff]  ;;  %s377_s18 = sand.u32 1, %s1529_s28  }
  0x1b   : > { %1395 = vmatprep.subr.bf16.mxu0 %v1650_v6  ;;  %1371 = vmatprep.subr.bf16.mxu1 %v1650_v6  ;;  %v829_v31 = vld [vmem:[%s402_s20 + $0x8] sm:$0xff]  ;;  %v828_v37 = vld [vmem:[%s402_s20] sm:$0xff]  ;;  %s1179_s10 = sshll.u32 %s377_s18, 3 }
  0x1c   : > { %v469_v12 = vld [vmem:[%s408_s23] sm:$0xff]  ;;  %s379_s13 = scalar_lea.vmem [#allocation2], %s1179_s10 }
  0x1d   : > { %448 = vperm.xlu1 %1470, %v417_v3   ;;  %440 = vperm.xlu0 %1469, %v417_v3   ;;  %v471_v18 = vld [vmem:[%s414_s26] sm:$0xff]  ;;  %s1056_s17 = sshll.u32 %s379_s13, 4  ;;  %s1752_s17 = int_to_ptr.vmem [resolvable:$true] %s1056_s17 }
  0x1e   : > { %s1475_s24 = scalar_lea.vmem %s1752_s17, 128  ;;  %p1482_p0 = scmp.lt.s32.totalorder %s1752_s17, %s1480_s25 }
  0x1f   : > { %p1476_p11 = scmp.ne.s32.totalorder %s1752_s17, %s1475_s24 }
  0x21   : > { %1472 = vset.pattern.permute.xlu1 %v1541_v7  ;;  %1471 = vset.pattern.permute.xlu0 %v1541_v7  ;;  %p1477_p12 = pnand %p1476_p11, %p1627_p5 }
  0x22   : > { %464 = vperm.xlu1 %1472, %v417_v3   ;;  %460 = vperm.xlu0 %1471, %v416_v2  }
  0x23   : > { %p1478_p13 = pneg %p1477_p12 }
  0x26   : > { %1474 = vset.pattern.permute.xlu0 %v1542_v14  ;;  %1473 = vset.pattern.permute.xlu1 %v1542_v14  ;;  %v472_v14 = vld [vmem:[%s414_s26 + $0x8] sm:$0xff]  ;;  %s1481_s26 = scalar_lea.vmem %s1480_s25, 256 }
  0x27   : > { %1013 = vperm.xlu0 %1474, %v1008_v15   ;;  %1010 = vperm.xlu1 %1473, %v1007_v16   ;;  %p1483_p1 = scmp.lt.s32.totalorder %s1481_s26, %s1475_s24 }
  0x29   : > { %p1484_p2 = por %p1483_p1, %p1482_p0 }
  0x2b   : > { %p1485_p3 = pnand %p1484_p2, %p1478_p13 }
  0x98   : > { %v445_v22 = vpop.permute.xlu1 %444  ;;  %v436_v23 = vpop.permute.xlu0 %435 }
  0x99   : > { %v451_v33 = vsel %vm432_vm4, %v436_v23, %v445_v22 }
  0x9c   : > { %v449_v27 = vpop.permute.xlu1 %448  ;;  %v441_v28 = vpop.permute.xlu0 %440 }
  0x9d   : > { %v452_v34 = vsel %vm432_vm4, %v441_v28, %v449_v27 }
  0xa1   : > { %v465_v35 = vpop.permute.xlu1 %464  ;;  %v461_v38 = vpop.permute.xlu0 %460 }
  0xa2   : > { %v468_v39 = vsel %vm458_vm5, %v465_v35, %v452_v34  ;;  %v467_v40 = vsel %vm458_vm5, %v461_v38, %v451_v33 }
  0xa3   : > { %v476_v41 = vmul.f32 %v474_v29, %v468_v39  ;;  %v654_v42 = vmul.f32 %v652_v30, %v468_v39  ;;  %v831_v43 = vmul.f32 %v829_v31, %v468_v39  ;;  %v475_v44 = vmul.f32 %v473_v32, %v467_v40 }
  0xa4   : > { %v653_v45 = vmul.f32 %v651_v36, %v467_v40  ;;  %v830_v46 = vmul.f32 %v828_v37, %v467_v40 }
  0xa5   : > { %v478_v47 = vmax.f32 %v476_v41, 0.0  ;;  %v656_v48 = vmax.f32 %v654_v42, 0.0  ;;  %v833_v49 = vmax.f32 %v831_v43, 0.0  ;;  %v477_v50 = vmax.f32 %v475_v44, 0.0 }
  0xa6   : > { %v655_v51 = vmax.f32 %v653_v45, 0.0  ;;  %v832_v52 = vmax.f32 %v830_v46, 0.0  ;;  %v1014_v22 = vpop.permute.xlu0 %1013  ;;  %v1011_v25 = vpop.permute.xlu1 %1010  ;;  %v1035_v44 = vand.u32 127, %v428_v17 }
  0xa7   : > { %v479_v53 = vpack.c.bf16 %v478_v47, %v477_v50  ;;  %vm1016_vm7 = vcmp.eq.s32.totalorder %v1014_v22, 1  ;;  %vm1015_vm9 = vcmp.eq.s32.totalorder %v1011_v25, 1 }
  0xa8   : > { %v657_v54 = vpack.c.bf16 %v656_v48, %v655_v51  ;;  %v834_v55 = vpack.c.bf16 %v833_v49, %v832_v52  ;;  %vm1037_vm11 = vcmp.eq.s32.totalorder %v1035_v44, 0 }
  0xa9   : > { %v480_v56 = vunpack.c.l.bf16 %v479_v53  ;;  %v481_v57 = vunpack.c.h.bf16 %v479_v53  ;;  %vm1038_vm12 = vmand %vm1036_vm10, %vm1037_vm11 }
  0xaa   : > { %v658_v58 = vunpack.c.l.bf16 %v657_v54  ;;  %v835_v59 = vunpack.c.l.bf16 %v834_v55  ;;  %v836_v0 = vunpack.c.h.bf16 %v834_v55  ;;  %v659_v1 = vunpack.c.h.bf16 %v657_v54 }
  0xab   : > { %1283 = vmatprep.mubr.msk.f32.mxu0 %vm484_vm6, %v480_v56  ;;  %v482_v60 = vsub.f32 %v477_v50, %v480_v56  ;;  %v483_v61 = vsub.f32 %v478_v47, %v481_v57 }
  0xac   : > { %v837_v62 = vsub.f32 %v832_v52, %v835_v59  ;;  %1284 = vmatmul.mubr.msk.f32.vlgmr.msra.gmra.mrb[0].mxu0 %vm484_vm6, %v481_v57  ;;  %v660_v63 = vsub.f32 %v655_v51, %v658_v58  ;;  %v838_v2 = vsub.f32 %v833_v49, %v836_v0  ;;  %v661_v3 = vsub.f32 %v656_v48, %v659_v1 }
  0xad   : > { %1397 = vmatpush3.bf16.msra.mxu0 %v1650_v6  ;;  %1268 = vmatprep.mubr.msk.f32.mxu1 %vm484_vm6, %v482_v60 }
  0xae   : > { %1328 = vmatprep.mubr.msk.f32.mxu0 %vm484_vm6, %v837_v62  ;;  %1269 = vmatmul.mubr.msk.f32.vlgmr.msra.gmra.mrb[0].mxu1 %vm484_vm6, %v483_v61 }
  0xaf   : > { %1373 = vmatpush3.bf16.msra.mxu1 %v1650_v6  ;;  %1298 = vmatprep.mubr.msk.f32.mxu1 %vm484_vm6, %v660_v63 }
  0xb0   : > { %1399 = vmatprep.subr.bf16.mxu0 %v1662_v10  ;;  %1375 = vmatprep.subr.bf16.mxu1 %v1662_v10 }
  0xb1   : > { %1401 = vmatpush3.bf16.msra.mxu0 %v1662_v10 }
  0xb2   : > { %1403 = vmatprep.subr.bf16.mxu0 %v1674_v13 }
  0xb3   : > { %1377 = vmatpush3.bf16.msra.mxu1 %v1662_v10 }
  0xb4   : > { %1379 = vmatprep.subr.bf16.mxu1 %v1674_v13 }
  0xb5   : > { %1405 = vmatpush3.bf16.msra.mxu0 %v1674_v13 }
  0xb6   : > { %1407 = vmatprep.subr.bf16.mxu0 %v1650_v6 }
  0xb7   : > { %1381 = vmatpush3.bf16.msra.mxu1 %v1674_v13 }
  0xb8   : > { %1329 = vmatmul.mubr.msk.f32.vlgmr.msra.gmra.mrb[2].mxu0 %vm484_vm6, %v838_v2  ;;  %1383 = vmatprep.subr.bf16.mxu1 %v1650_v6 }
  0xb9   : > { %1409 = vmatpush3.bf16.msra.mxu0 %v1650_v6  ;;  %1343 = vmatprep.mubr.msk.f32.mxu0 %vm484_vm6, %v835_v59 }
  0xba   : > { %1299 = vmatmul.mubr.msk.f32.vlgmr.msra.gmra.mrb[2].mxu1 %vm484_vm6, %v661_v3  ;;  %1411 = vmatprep.subr.bf16.mxu0 %v1662_v10 }
  0xbb   : > { %1385 = vmatpush3.bf16.msra.mxu1 %v1650_v6  ;;  %1313 = vmatprep.mubr.msk.f32.mxu1 %vm484_vm6, %v658_v58 }
  0xbc   : > { %1387 = vmatprep.subr.bf16.mxu1 %v1662_v10 }
  0xbd   : > { %1413 = vmatpush3.bf16.msra.mxu0 %v1662_v10 }
  0xbe   : > { %1415 = vmatprep.subr.bf16.mxu0 %v1674_v13 }
  0xbf   : > { %1389 = vmatpush3.bf16.msra.mxu1 %v1662_v10  ;;  %v470_v10 = vld [vmem:[%s408_s23 + $0x8] sm:$0xff]  ;;  %s1043_s23 = scalar_lea.sflag [#allocation3], %s377_s18 }
  0xc0   : > { %1391 = vmatprep.subr.bf16.mxu1 %v1674_v13 }
  0xc1   : > { %1417 = vmatpush3.bf16.msra.mxu0 %v1674_v13 }
  0xc3   : > { %1393 = vmatpush3.bf16.msra.mxu1 %v1674_v13 }
  0xc4   : > { %1344 = vmatmul.mubr.msk.f32.vlgmr.msra.gmra.mrb[2].mxu0 %vm484_vm6, %v836_v0 }
  0xc6   : > { %1314 = vmatmul.mubr.msk.f32.vlgmr.msra.gmra.mrb[2].mxu1 %vm484_vm6, %v659_v1 }
 0x17f   : > { %v1285_v4 = vpop.f32.mrb[0].mxu0 }
 0x180   : > { %v638_v5 = vpop.f32.mrb[1].mxu0 }
 0x181   : > { %v1270_v6 = vpop.f32.mrb[0].mxu1 }
 0x182   : > { %v644_v7 = vadd.f32 %v1285_v4, %v1270_v6  ;;  %v557_v8 = vpop.f32.mrb[1].mxu1 }
 0x183   : > { %v639_v9 = vadd.f32 %v638_v5, %v557_v8 }
 0x184   : > { %v648_v16 = vmul.f32 %v644_v7, %v470_v10 }
 0x185   : > { %v647_v23 = vmul.f32 %v639_v9, %v469_v12 }
 0x197   : > { %v1345_v11 = vpop.f32.mrb[2].mxu0 }
 0x198   : > { %v992_v13 = vpop.f32.mrb[3].mxu0  ;;  %v1002_v26 = vmul.f32 %v1345_v11, %v472_v14 }
 0x199   : > { %v1315_v15 = vpop.f32.mrb[2].mxu1  ;;  %v1001_v28 = vmul.f32 %v992_v13, %v471_v18 }
 0x19a   : > { %v825_v20 = vmul.f32 %v1315_v15, %v472_v14  ;;  %v815_v21 = vpop.f32.mrb[3].mxu1 }
 0x19b   : > { %v824_v24 = vmul.f32 %v815_v21, %v471_v18 }
 0x19c   : > { %v827_v27 = vadd.f32 %v825_v20, %v648_v16 }
 0x19d   : > { %v826_v29 = vadd.f32 %v824_v24, %v647_v23 }
 0x19e   : > { %v1004_v30 = vadd.f32 %v1002_v26, %v827_v27 }
 0x19f   : > { %v1003_v31 = vadd.f32 %v1001_v28, %v826_v29 }
 0x1a0   : > { %v1018_v32 = vsel %vm1016_vm7, %v1004_v30, 0.0 }
 0x1a1   : > { %v1021_v33 = vsel %vm1019_vm8, %v1018_v32, 0.0  ;;  %v1017_v34 = vsel %vm1015_vm9, %v1003_v31, 0.0 }
 0x1a2   : > { %v1020_v35 = vsel %vm1019_vm8, %v1017_v34, 0.0 }
 0x1a3   : > { %v1022_v36 = vadd.f32 %v1021_v33, %v1020_v35 }
 0x1a5   : > { %1023 = vadd.xlane.f32.xlu1 %v1022_v36 }
 0x232   : > { %v1024_v37 = vpop.xlane.xlu1 %1023 }
 0x233   : > { %v1025_v38 = vrot.slane %v1024_v37, 4 }
 0x235   : > { %v1026_v39 = vadd.f32 %v1025_v38, %v1024_v37 }
 0x237   : > { %v1027_v40 = vrot.slane %v1026_v39, 2 }
 0x239   : > { %v1028_v41 = vadd.f32 %v1027_v40, %v1026_v39 }
 0x23b   : > { %v1029_v42 = vrot.slane %v1028_v41, 1 }
 0x23d   : > { %v1030_v43 = vadd.f32 %v1029_v42, %v1028_v41 }
 0x23f   : > { %1424 = vpush %v1030_v43 }
 0x270   : > { %s1425_s19 = spop %1424 }
 0x271   : > { %v1039_v45 = vstv %s1425_s19 }
 0x272   : > { %v1040_v17 = vsel %vm1038_vm12, %v1039_v45, 0.0 }
 0x273   : > { %1041 = vst [vmem:[%s379_s13] sm:$0xff] %v1040_v17 }
 0x274   : > { %1488 = shalt.err (!%p1485_p3)
}
 0x275   : > { %s1489_s18 = scalar_lea.hbm %s1750_s22, 128  ;;  %s1493_s13 = scalar_lea.hbm %s1800_s8, 256 }
 0x276   : > { %p1490_p4 = scmp.ne.s32.totalorder %s1750_s22, %s1489_s18  ;;  %p1494_p9 = scmp.lt.u32.totalorder %s1750_s22, %s1800_s8 }
 0x277   : > { %p1495_p10 = scmp.lt.u32.totalorder %s1493_s13, %s1489_s18  ;;  %p1497_p12 = scmp.lt.u32.totalorder %s1489_s18, %s1750_s22 }
 0x278   : > { %p1491_p7 = pnand %p1490_p4, %p1627_p5 }
 0x279   : > { %p1496_p11 = por %p1495_p10, %p1494_p9 }
 0x27a   : > { %p1492_p8 = pneg %p1491_p7 }
 0x27b   : > { %p1498_p13 = por %p1497_p12, %p1496_p11 }
 0x27d   : > { %p1499_p0 = pnand %p1498_p13, %p1492_p8 }
 0x27f   : > { %1502 = shalt.err (!%p1499_p0)
}
 0x280   : > { %1426 = dma.vmem_to_hbm [thread:$0]  (%p1627_p5), %s1752_s17, 128, %s1750_s22, %s1043_s23  }
 0x281 PF: > { %p1432_p1 = scmp.ge.s32.totalorder %s1537_s30, 2  ;;  %s1068_s21 = sand.u32 1, %s1525_s27  }
 0x282   : > { %s1069_s24 = scalar_lea.sflag [#allocation3], %s1068_s21 }
 0x283   : > { %p1429_p2 = pnand %p1432_p1, %p1631_p6 }
 0x285   : > { %1520 = dma.done.wait (!%p1429_p2), %s1069_s24, 128  }
 0x286   : > { %1522 = vsyncadd (!%p1429_p2), %s1069_s24, 4294967168  ;;  %p18_p3 = scmp.ge.s32.totalorder %s1614_s11, 4   ;;  %s1803_s27 = smov %s1529_s28 }
 0x287   : > { %s1804_s28 = smov %s1533_s29  ;;  %s1805_s29 = smov %s1625_s14 }
 0x288   : > { %s1806_s30 = smov %s1614_s11  ;;  %20 = sbr.rel (!%p18_p3) target bundleno = 3 (0x3), region = 102 }
 0x28f   :  { %1074 = vsyncpa [#allocation3], 1 }
 0x290   :  { %1076 = vsyncpa [#allocation3 + $0x1], 1 }

</bundles_post_ra>
